<compile_context>
chip_gen: v7x
topology: tpu7x:2x2x1
jax: 0.10.0
libtpu: 0.0.40
codegen_flags: <defaults>
</compile_context>

<pallas_src>
import functools
import math

import jax
import jax.numpy as jnp
from jax import lax
from jax.experimental import pallas as pl
from jax.experimental.pallas import tpu as pltpu

NEG_INF = -1e9
LANE = 128


def _round_up(x, m):
    return (x + m - 1) // m * m


def _vmem_capacity_bytes(default=64 * 1024 * 1024):
    """Generation-aware VMEM capacity (safe fallback if the query fails)."""
    try:
        info = pltpu.get_tpu_info()
        return int(getattr(info, "vmem_capacity_bytes", default))
    except Exception:
        return default


def mha_kernel(q_ref, k_ref, v_ref, mask_ref,
               wq_ref, wk_ref, wv_ref, wo_ref,
               o_ref,
               kp_ref, vp_ref, qp_ref, ctx_ref,
               *, n_heads, dkp, unroll_heads):
    qi = pl.program_id(1)

    # K/V projections once per batch element (q-tile axis is "arbitrary"); the
    # projected, head-padded K/V stay resident in VMEM scratch and are reused
    # by every q tile of this batch element.
    @pl.when(qi == 0)
    def _():
        kp_ref[...] = jnp.dot(
            k_ref[0], wk_ref[...],
            preferred_element_type=jnp.float32).astype(jnp.bfloat16)
        vp_ref[...] = jnp.dot(
            v_ref[0], wv_ref[...],
            preferred_element_type=jnp.float32).astype(jnp.bfloat16)

    # Q projection for this q tile (1/sqrt(d_k) already folded into Wq).
    qp_ref[...] = jnp.dot(
        q_ref[0], wq_ref[...],
        preferred_element_type=jnp.float32).astype(jnp.bfloat16)

    # Additive mask bias, built once per q tile and shared by all heads:
    # 0 where kept, -1e9 where masked (int8 mask -> two cheap VPU ops).
    m = (mask_ref[0] != 0).astype(jnp.float32)                  # (tq, Sk)
    bias = (m - 1.0) * jnp.float32(-NEG_INF)
    row_keep = jnp.max(m, axis=-1, keepdims=True) > 0.0         # (tq, 1)

    def head_body(h, carry):
        off = pl.multiple_of(h * dkp, LANE)        # 128-lane aligned head block
        qh = qp_ref[:, pl.ds(off, dkp)]            # (tq, dkp) bf16
        kh = kp_ref[:, pl.ds(off, dkp)]            # (Sk, dkp) bf16
        vh = vp_ref[:, pl.ds(off, dkp)]            # (Sk, dkp) bf16

        # scores (tq, Sk): contract dkp (zero padding contributes nothing).
        s = lax.dot_general(qh, kh, (((1,), (1,)), ((), ())),
                            preferred_element_type=jnp.float32)
        s = s + bias

        # Unnormalized softmax in f32; masked columns underflow to exactly 0.
        mx = jnp.max(s, axis=-1, keepdims=True)
        e = jnp.exp(s - mx)
        l = jnp.sum(e, axis=-1, keepdims=True)

        # P@V first, then normalize the (tq, dkp) context (cheaper than
        # normalizing the (tq, Sk) slab); approx reciprocal -> EUP slot.
        ctx = jnp.dot(e.astype(jnp.bfloat16), vh,
                      preferred_element_type=jnp.float32)        # (tq, dkp)
        ctx = ctx * pl.reciprocal(l, approx=True)
        ctx_ref[:, pl.ds(off, dkp)] = ctx.astype(jnp.bfloat16)
        return carry

    lax.fori_loop(0, n_heads, head_body, 0, unroll=unroll_heads)

    # Single full-contraction output projection over all heads.
    out = jnp.dot(ctx_ref[...], wo_ref[...],
                  preferred_element_type=jnp.float32)            # (tq, H)
    # masked_fill(p_attn, mask==0, 0): only fully-masked query rows need an
    # explicit zero (masked columns are already exactly 0) -> one select here.
    out = jnp.where(row_keep, out, jnp.float32(0.0))
    o_ref[0] = out.astype(o_ref.dtype)


def multi_headed_attention(query, key, value, mask, wq, wk, wv, wo, n_heads,
                           *, q_tile=256):
    """MultiHeadedAttention forward.

    query: (B, Sq, H); key/value: (B, Sk, H); mask: (B, Sq, Sk) (nonzero =
    keep, 0 = pad) or None. Weights are stored already transposed (y = x @ W);
    no biases, matching the PyTorch module.
    """
    B, Sq, H = query.shape
    Sk = key.shape[1]
    assert value.shape[1] == Sk
    assert H % n_heads == 0
    d_k = H // n_heads

    # Per-head blocks padded to a 128-lane multiple so head slices inside the
    # kernel stay lane-aligned (no relayout); padding cols/rows are zero so the
    # math is unchanged.
    dkp = _round_up(d_k, LANE)
    Hp = n_heads * dkp

    # q-row tiling: pad Sq so every tile is full; padded rows are fully masked
    # and sliced off at the end. Sweep q_tile (128/256/512) per generation;
    # keep it smaller on v7x (64 MiB VMEM).
    q_tile = _round_up(max(q_tile, 8), 8)
    tq = q_tile if Sq > q_tile else _round_up(max(Sq, 8), 8)
    Sq_pad = _round_up(Sq, tq)
    n_qt = Sq_pad // tq

    if mask is None:
        mask = jnp.ones((B, Sq, Sk), jnp.int8)
    mask_i8 = (mask != 0).astype(jnp.int8)

    q_in = query
    pad_q = Sq_pad - Sq
    if pad_q:
        q_in = jnp.pad(query, ((0, 0), (0, pad_q), (0, 0)))
        mask_i8 = jnp.pad(mask_i8, ((0, 0), (0, pad_q), (0, 0)))  # fully masked

    # Host-side weight prep: 1/sqrt(d_k) folded into Wq, per-head blocks padded
    # to dkp lanes, bf16 MXU operands with f32 accumulation in-kernel.
    scale = 1.0 / math.sqrt(d_k)

    def pad_proj(w):                                  # (H, H) -> (H, Hp) bf16
        w3 = w.reshape(H, n_heads, d_k)
        w3 = jnp.pad(w3, ((0, 0), (0, 0), (0, dkp - d_k)))
        return w3.reshape(H, Hp).astype(jnp.bfloat16)

    wq_b = pad_proj(wq * scale)
    wk_b = pad_proj(wk)
    wv_b = pad_proj(wv)
    wo_b = jnp.pad(wo.reshape(n_heads, d_k, H),
                   ((0, 0), (0, dkp - d_k), (0, 0))
                   ).reshape(Hp, H).astype(jnp.bfloat16)

    q_b = q_in.astype(jnp.bfloat16)
    k_b = key.astype(jnp.bfloat16)
    v_b = value.astype(jnp.bfloat16)

    kernel = functools.partial(mha_kernel, n_heads=n_heads, dkp=dkp,
                               unroll_heads=n_heads <= 8)

    # Weight block indices never change -> single-buffer them to save VMEM.
    def w_spec(shape):
        return pl.BlockSpec(shape, lambda b, i: (0, 0),
                            pipeline_mode=pl.Buffered(1))

    flops = 2 * B * (Sq_pad * H * Hp                      # Q projection
                     + 2 * Sk * H * Hp                    # K, V (once per b)
                     + 2 * n_heads * Sq_pad * Sk * dkp    # QK^T + PV
                     + Sq_pad * Hp * H)                   # output projection
    transcendentals = B * n_heads * Sq_pad * Sk
    bytes_accessed = ((q_b.size + k_b.size + v_b.size) * 2
                      + mask_i8.size
                      + (wq_b.size + wk_b.size + wv_b.size + wo_b.size) * 2
                      + B * Sq_pad * H * 4)

    vmem_limit = min(3 * _vmem_capacity_bytes() // 4, 100 * 1024 * 1024)

    # TODO(synk): output could be bf16 (and lane-padded to a 128 multiple) if
    # the downstream consumer tolerates it; kept f32 to match the module.
    out = pl.pallas_call(
        kernel,
        out_shape=jax.ShapeDtypeStruct((B, Sq_pad, H), jnp.float32),
        grid_spec=pltpu.PrefetchScalarGridSpec(
            num_scalar_prefetch=0,
            grid=(B, n_qt),
            in_specs=[
                pl.BlockSpec((1, tq, H), lambda b, i: (b, i, 0)),   # Q tile
                pl.BlockSpec((1, Sk, H), lambda b, i: (b, 0, 0)),   # K (per b)
                pl.BlockSpec((1, Sk, H), lambda b, i: (b, 0, 0)),   # V (per b)
                pl.BlockSpec((1, tq, Sk), lambda b, i: (b, i, 0)),  # mask int8
                w_spec((H, Hp)),                                    # Wq scaled
                w_spec((H, Hp)),                                    # Wk
                w_spec((H, Hp)),                                    # Wv
                w_spec((Hp, H)),                                    # Wo
            ],
            out_specs=pl.BlockSpec((1, tq, H), lambda b, i: (b, i, 0)),
            scratch_shapes=[
                pltpu.VMEM((Sk, Hp), jnp.bfloat16),   # projected K (resident)
                pltpu.VMEM((Sk, Hp), jnp.bfloat16),   # projected V (resident)
                pltpu.VMEM((tq, Hp), jnp.bfloat16),   # projected Q tile
                pltpu.VMEM((tq, Hp), jnp.bfloat16),   # per-head context
            ],
        ),
        compiler_params=pltpu.CompilerParams(
            # B is "parallel" (megacore); the q-tile axis must stay
            # "arbitrary" because q tiles of one batch element reuse the
            # projected-K/V scratch written at q-tile 0.
            dimension_semantics=("parallel", "arbitrary"),
            vmem_limit_bytes=vmem_limit,
        ),
        cost_estimate=pl.CostEstimate(
            flops=flops, transcendentals=transcendentals,
            bytes_accessed=bytes_accessed),
    )(q_b, k_b, v_b, mask_i8, wq_b, wk_b, wv_b, wo_b)

    return out[:, :Sq, :] if pad_q else out


def mha_reference(query, key, value, mask, wq, wk, wv, wo, n_heads):
    """Plain-JAX f32 reference matching the PyTorch module semantics."""
    B, Sq, H = query.shape
    d_k = H // n_heads

    def proj(x, w):
        y = jnp.dot(x, w)
        return y.reshape(B, -1, n_heads, d_k).transpose(0, 2, 1, 3)

    q = proj(query, wq)
    k = proj(key, wk)
    v = proj(value, wv)
    scores = jnp.einsum("bhqd,bhkd->bhqk", q, k) / math.sqrt(d_k)
    m = mask[:, None, :, :]
    scores = jnp.where(m == 0, NEG_INF, scores)
    p = jax.nn.softmax(scores, axis=-1)
    p = jnp.where(m == 0, 0.0, p)
    ctx = jnp.einsum("bhqk,bhkd->bhqd", p, v)
    ctx = ctx.transpose(0, 2, 1, 3).reshape(B, Sq, H)
    return jnp.dot(ctx, wo)


if __name__ == "__main__":
    B, S, H, HEADS = 2, 8, 32, 4

    root = jax.random.PRNGKey(0)
    kq, kk, kv, kw, kr = jax.random.split(root, 5)
    query = jax.random.normal(kq, (B, S, H), jnp.float32)
    key = jax.random.normal(kk, (B, S, H), jnp.float32)
    value = jax.random.normal(kv, (B, S, H), jnp.float32)

    # mask (B, Sq, Sk): batch 1 has its last two positions fully padded.
    mask = jnp.ones((B, S, S), jnp.float32)
    valid = jnp.arange(S) < (S - 2)
    mask = mask.at[1].set((valid[:, None] & valid[None, :]).astype(jnp.float32))

    ws = jax.random.split(kw, 4)
    wscale = 1.0 / math.sqrt(H)
    wq, wk, wv, wo = [jax.random.normal(k, (H, H), jnp.float32) * wscale
                      for k in ws]

    # Case 1: single q tile.
    out = multi_headed_attention(query, key, value, mask, wq, wk, wv, wo, HEADS)
    out = jax.block_until_ready(out)
    assert out.shape == (B, S, H)
    assert bool(jnp.all(jnp.isfinite(out)))
    ref = mha_reference(query, key, value, mask, wq, wk, wv, wo, HEADS)
    err1 = float(jnp.max(jnp.abs(out - ref)))
    assert err1 < 7.5e-2, f"case1 max abs error {err1}"

    # Case 2: Sq=13 with q_tile=8 -> 2 q tiles plus a padded tail. Exercises
    # the Sq-padding path and the hoisted-K/V scratch reuse across q tiles.
    S2 = 13
    q2 = jax.random.normal(kr, (B, S2, H), jnp.float32)
    k2 = jax.random.normal(jax.random.fold_in(kr, 1), (B, S2, H), jnp.float32)
    v2 = jax.random.normal(jax.random.fold_in(kr, 2), (B, S2, H), jnp.float32)
    valid2 = jnp.arange(S2) < (S2 - 3)
    m2 = jnp.ones((B, S2, S2), jnp.float32)
    m2 = m2.at[1].set((valid2[:, None] & valid2[None, :]).astype(jnp.float32))

    out2 = multi_headed_attention(q2, k2, v2, m2, wq, wk, wv, wo, HEADS,
                                  q_tile=8)
    out2 = jax.block_until_ready(out2)
    assert out2.shape == (B, S2, H)
    ref2 = mha_reference(q2, k2, v2, m2, wq, wk, wv, wo, HEADS)
    err2 = float(jnp.max(jnp.abs(out2 - ref2)))
    assert err2 < 7.5e-2, f"case2 max abs error {err2}"

    print("KERNEL_OK")
</pallas_src>

<mosaic_0001>
module attributes {stable_mosaic.version = 11 : i64} {
  func.func @mha_kernel(%arg0: i32, %arg1: i32, %arg2: memref<1x8x32xbf16, #tpu.memory_space<vmem>>, %arg3: memref<1x8x32xbf16, #tpu.memory_space<vmem>>, %arg4: memref<1x8x32xbf16, #tpu.memory_space<vmem>>, %arg5: memref<1x8x8xi8, #tpu.memory_space<vmem>>, %arg6: memref<32x512xbf16, #tpu.memory_space<vmem>>, %arg7: memref<32x512xbf16, #tpu.memory_space<vmem>>, %arg8: memref<32x512xbf16, #tpu.memory_space<vmem>>, %arg9: memref<512x32xbf16, #tpu.memory_space<vmem>>, %arg10: memref<1x8x32xf32, #tpu.memory_space<vmem>>, %arg11: memref<8x512xbf16, #tpu.memory_space<vmem>>, %arg12: memref<8x512xbf16, #tpu.memory_space<vmem>>, %arg13: memref<8x512xbf16, #tpu.memory_space<vmem>>, %arg14: memref<8x512xbf16, #tpu.memory_space<vmem>>) attributes {dimension_semantics = [#tpu.dimension_semantics<parallel>, #tpu.dimension_semantics<arbitrary>], iteration_bounds = array<i64: 2, 1>, scalar_prefetch = 0 : i64, scratch_operands = 4 : i64, tpu.core_type = #tpu.core_type<tc>, window_params = [{transform_indices = @transform_0, window_bounds = array<i64: 1, 8, 32>}, {transform_indices = @transform_1, window_bounds = array<i64: 1, 8, 32>}, {transform_indices = @transform_2, window_bounds = array<i64: 1, 8, 32>}, {transform_indices = @transform_3, window_bounds = array<i64: 1, 8, 8>}, {pipeline_mode = #tpu.pipeline_mode<synchronous>, transform_indices = @transform_4, window_bounds = array<i64: 32, 512>}, {pipeline_mode = #tpu.pipeline_mode<synchronous>, transform_indices = @transform_5, window_bounds = array<i64: 32, 512>}, {pipeline_mode = #tpu.pipeline_mode<synchronous>, transform_indices = @transform_6, window_bounds = array<i64: 32, 512>}, {pipeline_mode = #tpu.pipeline_mode<synchronous>, transform_indices = @transform_7, window_bounds = array<i64: 512, 32>}, {transform_indices = @transform_8, window_bounds = array<i64: 1, 8, 32>}]} {
    %c0_i32 = arith.constant 0 : i32
    %0 = arith.cmpi eq, %arg1, %c0_i32 : i32
    %1 = arith.extui %0 : i1 to i32
    %c0_i32_0 = arith.constant 0 : i32
    %2 = arith.cmpi ne, %1, %c0_i32_0 : i32
    scf.if %2 {
      %c0_59 = arith.constant 0 : index
      %c0_60 = arith.constant 0 : index
      %c0_61 = arith.constant 0 : index
      %133 = vector.load %arg3[%c0_59, %c0_60, %c0_61] : memref<1x8x32xbf16, #tpu.memory_space<vmem>>, vector<1x8x32xbf16>
      %134 = vector.shape_cast %133 : vector<1x8x32xbf16> to vector<8x32xbf16>
      %c0_62 = arith.constant 0 : index
      %c0_63 = arith.constant 0 : index
      %135 = vector.load %arg7[%c0_62, %c0_63] : memref<32x512xbf16, #tpu.memory_space<vmem>>, vector<32x512xbf16>
      %cst_64 = arith.constant dense<0.000000e+00> : vector<8x512xf32>
      %136 = tpu.matmul %134, %135, %cst_64 {dimension_numbers = #tpu.dot_dimension_numbers<[1], [0], [0], [1], [0, 0, 1, 1], [], []>} : vector<8x32xbf16>, vector<32x512xbf16>, vector<8x512xf32> -> vector<8x512xf32>
      %137 = arith.truncf %136 : vector<8x512xf32> to vector<8x512xbf16>
      %c0_65 = arith.constant 0 : index
      %c0_66 = arith.constant 0 : index
      %138 = vector.load %arg11[%c0_65, %c0_66] : memref<8x512xbf16, #tpu.memory_space<vmem>>, vector<8x512xbf16>
      tpu.vector_store %arg11[%c0_65, %c0_66], %137 {strides = array<i32>} : memref<8x512xbf16, #tpu.memory_space<vmem>>, vector<8x512xbf16>,
      %c0_67 = arith.constant 0 : index
      %c0_68 = arith.constant 0 : index
      %c0_69 = arith.constant 0 : index
      %139 = vector.load %arg4[%c0_67, %c0_68, %c0_69] : memref<1x8x32xbf16, #tpu.memory_space<vmem>>, vector<1x8x32xbf16>
      %140 = vector.shape_cast %139 : vector<1x8x32xbf16> to vector<8x32xbf16>
      %c0_70 = arith.constant 0 : index
      %c0_71 = arith.constant 0 : index
      %141 = vector.load %arg8[%c0_70, %c0_71] : memref<32x512xbf16, #tpu.memory_space<vmem>>, vector<32x512xbf16>
      %cst_72 = arith.constant dense<0.000000e+00> : vector<8x512xf32>
      %142 = tpu.matmul %140, %141, %cst_72 {dimension_numbers = #tpu.dot_dimension_numbers<[1], [0], [0], [1], [0, 0, 1, 1], [], []>} : vector<8x32xbf16>, vector<32x512xbf16>, vector<8x512xf32> -> vector<8x512xf32>
      %143 = arith.truncf %142 : vector<8x512xf32> to vector<8x512xbf16>
      %c0_73 = arith.constant 0 : index
      %c0_74 = arith.constant 0 : index
      %144 = vector.load %arg12[%c0_73, %c0_74] : memref<8x512xbf16, #tpu.memory_space<vmem>>, vector<8x512xbf16>
      tpu.vector_store %arg12[%c0_73, %c0_74], %143 {strides = array<i32>} : memref<8x512xbf16, #tpu.memory_space<vmem>>, vector<8x512xbf16>,
    } else {
    }
    %c0 = arith.constant 0 : index
    %c0_1 = arith.constant 0 : index
    %c0_2 = arith.constant 0 : index
    %3 = vector.load %arg2[%c0, %c0_1, %c0_2] : memref<1x8x32xbf16, #tpu.memory_space<vmem>>, vector<1x8x32xbf16>
    %4 = vector.shape_cast %3 : vector<1x8x32xbf16> to vector<8x32xbf16>
    %c0_3 = arith.constant 0 : index
    %c0_4 = arith.constant 0 : index
    %5 = vector.load %arg6[%c0_3, %c0_4] : memref<32x512xbf16, #tpu.memory_space<vmem>>, vector<32x512xbf16>
    %cst = arith.constant dense<0.000000e+00> : vector<8x512xf32>
    %6 = tpu.matmul %4, %5, %cst {dimension_numbers = #tpu.dot_dimension_numbers<[1], [0], [0], [1], [0, 0, 1, 1], [], []>} : vector<8x32xbf16>, vector<32x512xbf16>, vector<8x512xf32> -> vector<8x512xf32>
    %7 = arith.truncf %6 : vector<8x512xf32> to vector<8x512xbf16>
    %c0_5 = arith.constant 0 : index
    %c0_6 = arith.constant 0 : index
    %8 = vector.load %arg13[%c0_5, %c0_6] : memref<8x512xbf16, #tpu.memory_space<vmem>>, vector<8x512xbf16>
    tpu.vector_store %arg13[%c0_5, %c0_6], %7 {strides = array<i32>} : memref<8x512xbf16, #tpu.memory_space<vmem>>, vector<8x512xbf16>,
    %c0_7 = arith.constant 0 : index
    %c0_8 = arith.constant 0 : index
    %c0_9 = arith.constant 0 : index
    %9 = vector.load %arg5[%c0_7, %c0_8, %c0_9] : memref<1x8x8xi8, #tpu.memory_space<vmem>>, vector<1x8x8xi8>
    %10 = vector.shape_cast %9 : vector<1x8x8xi8> to vector<8x8xi8>
    %c0_i8 = arith.constant 0 : i8
    %11 = vector.broadcast %c0_i8 : i8 to vector<8x8xi8>
    %12 = arith.cmpi ne, %10, %11 : vector<8x8xi8>
    %13 = arith.extui %12 : vector<8x8xi1> to vector<8x8xi32>
    %14 = arith.sitofp %13 : vector<8x8xi32> to vector<8x8xf32>
    %cst_10 = arith.constant 1.000000e+00 : f32
    %15 = vector.broadcast %cst_10 : f32 to vector<8x8xf32>
    %16 = arith.subf %14, %15 : vector<8x8xf32>
    %cst_11 = arith.constant 1.000000e+09 : f32
    %17 = vector.broadcast %cst_11 : f32 to vector<8x8xf32>
    %18 = arith.mulf %16, %17 : vector<8x8xf32>
    %cst_12 = arith.constant dense<0xFF800000> : vector<8xf32>
    %19 = vector.multi_reduction <maximumf>, %14, %cst_12 [1] : vector<8x8xf32> to vector<8xf32>
    %20 = vector.shape_cast %19 : vector<8xf32> to vector<8x1xf32>
    %cst_13 = arith.constant 0.000000e+00 : f32
    %21 = vector.broadcast %cst_13 : f32 to vector<8x1xf32>
    %22 = arith.cmpf ogt, %20, %21 : vector<8x1xf32>
    %c0_i32_14 = arith.constant 0 : i32
    %c128_i32 = arith.constant 128 : i32
    %23 = arith.muli %c0_i32_14, %c128_i32 : i32
    %24 = tpu.assume_multiple %23, 128 : i32
    %c0_15 = arith.constant 0 : index
    %25 = arith.index_cast %24 : i32 to index
    %26 = vector.load %arg13[%c0_15, %25] : memref<8x512xbf16, #tpu.memory_space<vmem>>, vector<8x128xbf16>
    %c0_16 = arith.constant 0 : index
    %27 = arith.index_cast %24 : i32 to index
    %28 = vector.load %arg11[%c0_16, %27] : memref<8x512xbf16, #tpu.memory_space<vmem>>, vector<8x128xbf16>
    %c0_17 = arith.constant 0 : index
    %29 = arith.index_cast %24 : i32 to index
    %30 = vector.load %arg12[%c0_17, %29] : memref<8x512xbf16, #tpu.memory_space<vmem>>, vector<8x128xbf16>
    %cst_18 = arith.constant dense<0.000000e+00> : vector<8x8xf32>
    %31 = tpu.matmul %26, %28, %cst_18 {dimension_numbers = #tpu.dot_dimension_numbers<[1], [1], [0], [0], [0, 0, 1, 0], [], []>} : vector<8x128xbf16>, vector<8x128xbf16>, vector<8x8xf32> -> vector<8x8xf32>
    %32 = arith.addf %31, %18 : vector<8x8xf32>
    %cst_19 = arith.constant dense<0xFF800000> : vector<8xf32>
    %33 = vector.multi_reduction <maximumf>, %32, %cst_19 [1] : vector<8x8xf32> to vector<8xf32>
    %34 = vector.shape_cast %33 : vector<8xf32> to vector<8x1xf32>
    %35 = vector.broadcast %34 : vector<8x1xf32> to vector<8x8xf32>
    %36 = arith.subf %32, %35 : vector<8x8xf32>
    %37 = math.exp %36 : vector<8x8xf32>
    %cst_20 = arith.constant dense<0.000000e+00> : vector<8xf32>
    %38 = vector.multi_reduction <add>, %37, %cst_20 [1] : vector<8x8xf32> to vector<8xf32>
    %39 = vector.shape_cast %38 : vector<8xf32> to vector<8x1xf32>
    %40 = arith.truncf %37 : vector<8x8xf32> to vector<8x8xbf16>
    %cst_21 = arith.constant dense<0.000000e+00> : vector<8x128xf32>
    %41 = tpu.matmul %40, %30, %cst_21 {dimension_numbers = #tpu.dot_dimension_numbers<[1], [0], [0], [1], [0, 0, 1, 1], [], []>} : vector<8x8xbf16>, vector<8x128xbf16>, vector<8x128xf32> -> vector<8x128xf32>
    %42 = tpu.reciprocal %39 {approx = true} : vector<8x1xf32> -> vector<8x1xf32>
    %43 = vector.broadcast %42 : vector<8x1xf32> to vector<8x128xf32>
    %44 = arith.mulf %41, %43 : vector<8x128xf32>
    %45 = arith.truncf %44 : vector<8x128xf32> to vector<8x128xbf16>
    %c0_22 = arith.constant 0 : index
    %46 = arith.index_cast %24 : i32 to index
    %47 = vector.load %arg14[%c0_22, %46] : memref<8x512xbf16, #tpu.memory_space<vmem>>, vector<8x128xbf16>
    tpu.vector_store %arg14[%c0_22, %46], %45 {strides = array<i32>} : memref<8x512xbf16, #tpu.memory_space<vmem>>, vector<8x128xbf16>,
    %c1_i32 = arith.constant 1 : i32
    %c128_i32_23 = arith.constant 128 : i32
    %48 = arith.muli %c1_i32, %c128_i32_23 : i32
    %49 = tpu.assume_multiple %48, 128 : i32
    %c0_24 = arith.constant 0 : index
    %50 = arith.index_cast %49 : i32 to index
    %51 = vector.load %arg13[%c0_24, %50] : memref<8x512xbf16, #tpu.memory_space<vmem>>, vector<8x128xbf16>
    %c0_25 = arith.constant 0 : index
    %52 = arith.index_cast %49 : i32 to index
    %53 = vector.load %arg11[%c0_25, %52] : memref<8x512xbf16, #tpu.memory_space<vmem>>, vector<8x128xbf16>
    %c0_26 = arith.constant 0 : index
    %54 = arith.index_cast %49 : i32 to index
    %55 = vector.load %arg12[%c0_26, %54] : memref<8x512xbf16, #tpu.memory_space<vmem>>, vector<8x128xbf16>
    %cst_27 = arith.constant dense<0.000000e+00> : vector<8x8xf32>
    %56 = tpu.matmul %51, %53, %cst_27 {dimension_numbers = #tpu.dot_dimension_numbers<[1], [1], [0], [0], [0, 0, 1, 0], [], []>} : vector<8x128xbf16>, vector<8x128xbf16>, vector<8x8xf32> -> vector<8x8xf32>
    %57 = arith.addf %56, %18 : vector<8x8xf32>
    %cst_28 = arith.constant dense<0xFF800000> : vector<8xf32>
    %58 = vector.multi_reduction <maximumf>, %57, %cst_28 [1] : vector<8x8xf32> to vector<8xf32>
    %59 = vector.shape_cast %58 : vector<8xf32> to vector<8x1xf32>
    %60 = vector.broadcast %59 : vector<8x1xf32> to vector<8x8xf32>
    %61 = arith.subf %57, %60 : vector<8x8xf32>
    %62 = math.exp %61 : vector<8x8xf32>
    %cst_29 = arith.constant dense<0.000000e+00> : vector<8xf32>
    %63 = vector.multi_reduction <add>, %62, %cst_29 [1] : vector<8x8xf32> to vector<8xf32>
    %64 = vector.shape_cast %63 : vector<8xf32> to vector<8x1xf32>
    %65 = arith.truncf %62 : vector<8x8xf32> to vector<8x8xbf16>
    %cst_30 = arith.constant dense<0.000000e+00> : vector<8x128xf32>
    %66 = tpu.matmul %65, %55, %cst_30 {dimension_numbers = #tpu.dot_dimension_numbers<[1], [0], [0], [1], [0, 0, 1, 1], [], []>} : vector<8x8xbf16>, vector<8x128xbf16>, vector<8x128xf32> -> vector<8x128xf32>
    %67 = tpu.reciprocal %64 {approx = true} : vector<8x1xf32> -> vector<8x1xf32>
    %68 = vector.broadcast %67 : vector<8x1xf32> to vector<8x128xf32>
    %69 = arith.mulf %66, %68 : vector<8x128xf32>
    %70 = arith.truncf %69 : vector<8x128xf32> to vector<8x128xbf16>
    %c0_31 = arith.constant 0 : index
    %71 = arith.index_cast %49 : i32 to index
    %72 = vector.load %arg14[%c0_31, %71] : memref<8x512xbf16, #tpu.memory_space<vmem>>, vector<8x128xbf16>
    tpu.vector_store %arg14[%c0_31, %71], %70 {strides = array<i32>} : memref<8x512xbf16, #tpu.memory_space<vmem>>, vector<8x128xbf16>,
    %c2_i32 = arith.constant 2 : i32
    %c128_i32_32 = arith.constant 128 : i32
    %73 = arith.muli %c2_i32, %c128_i32_32 : i32
    %74 = tpu.assume_multiple %73, 128 : i32
    %c0_33 = arith.constant 0 : index
    %75 = arith.index_cast %74 : i32 to index
    %76 = vector.load %arg13[%c0_33, %75] : memref<8x512xbf16, #tpu.memory_space<vmem>>, vector<8x128xbf16>
    %c0_34 = arith.constant 0 : index
    %77 = arith.index_cast %74 : i32 to index
    %78 = vector.load %arg11[%c0_34, %77] : memref<8x512xbf16, #tpu.memory_space<vmem>>, vector<8x128xbf16>
    %c0_35 = arith.constant 0 : index
    %79 = arith.index_cast %74 : i32 to index
    %80 = vector.load %arg12[%c0_35, %79] : memref<8x512xbf16, #tpu.memory_space<vmem>>, vector<8x128xbf16>
    %cst_36 = arith.constant dense<0.000000e+00> : vector<8x8xf32>
    %81 = tpu.matmul %76, %78, %cst_36 {dimension_numbers = #tpu.dot_dimension_numbers<[1], [1], [0], [0], [0, 0, 1, 0], [], []>} : vector<8x128xbf16>, vector<8x128xbf16>, vector<8x8xf32> -> vector<8x8xf32>
    %82 = arith.addf %81, %18 : vector<8x8xf32>
    %cst_37 = arith.constant dense<0xFF800000> : vector<8xf32>
    %83 = vector.multi_reduction <maximumf>, %82, %cst_37 [1] : vector<8x8xf32> to vector<8xf32>
    %84 = vector.shape_cast %83 : vector<8xf32> to vector<8x1xf32>
    %85 = vector.broadcast %84 : vector<8x1xf32> to vector<8x8xf32>
    %86 = arith.subf %82, %85 : vector<8x8xf32>
    %87 = math.exp %86 : vector<8x8xf32>
    %cst_38 = arith.constant dense<0.000000e+00> : vector<8xf32>
    %88 = vector.multi_reduction <add>, %87, %cst_38 [1] : vector<8x8xf32> to vector<8xf32>
    %89 = vector.shape_cast %88 : vector<8xf32> to vector<8x1xf32>
    %90 = arith.truncf %87 : vector<8x8xf32> to vector<8x8xbf16>
    %cst_39 = arith.constant dense<0.000000e+00> : vector<8x128xf32>
    %91 = tpu.matmul %90, %80, %cst_39 {dimension_numbers = #tpu.dot_dimension_numbers<[1], [0], [0], [1], [0, 0, 1, 1], [], []>} : vector<8x8xbf16>, vector<8x128xbf16>, vector<8x128xf32> -> vector<8x128xf32>
    %92 = tpu.reciprocal %89 {approx = true} : vector<8x1xf32> -> vector<8x1xf32>
    %93 = vector.broadcast %92 : vector<8x1xf32> to vector<8x128xf32>
    %94 = arith.mulf %91, %93 : vector<8x128xf32>
    %95 = arith.truncf %94 : vector<8x128xf32> to vector<8x128xbf16>
    %c0_40 = arith.constant 0 : index
    %96 = arith.index_cast %74 : i32 to index
    %97 = vector.load %arg14[%c0_40, %96] : memref<8x512xbf16, #tpu.memory_space<vmem>>, vector<8x128xbf16>
    tpu.vector_store %arg14[%c0_40, %96], %95 {strides = array<i32>} : memref<8x512xbf16, #tpu.memory_space<vmem>>, vector<8x128xbf16>,
    %c3_i32 = arith.constant 3 : i32
    %c128_i32_41 = arith.constant 128 : i32
    %98 = arith.muli %c3_i32, %c128_i32_41 : i32
    %99 = tpu.assume_multiple %98, 128 : i32
    %c0_42 = arith.constant 0 : index
    %100 = arith.index_cast %99 : i32 to index
    %101 = vector.load %arg13[%c0_42, %100] : memref<8x512xbf16, #tpu.memory_space<vmem>>, vector<8x128xbf16>
    %c0_43 = arith.constant 0 : index
    %102 = arith.index_cast %99 : i32 to index
    %103 = vector.load %arg11[%c0_43, %102] : memref<8x512xbf16, #tpu.memory_space<vmem>>, vector<8x128xbf16>
    %c0_44 = arith.constant 0 : index
    %104 = arith.index_cast %99 : i32 to index
    %105 = vector.load %arg12[%c0_44, %104] : memref<8x512xbf16, #tpu.memory_space<vmem>>, vector<8x128xbf16>
    %cst_45 = arith.constant dense<0.000000e+00> : vector<8x8xf32>
    %106 = tpu.matmul %101, %103, %cst_45 {dimension_numbers = #tpu.dot_dimension_numbers<[1], [1], [0], [0], [0, 0, 1, 0], [], []>} : vector<8x128xbf16>, vector<8x128xbf16>, vector<8x8xf32> -> vector<8x8xf32>
    %107 = arith.addf %106, %18 : vector<8x8xf32>
    %cst_46 = arith.constant dense<0xFF800000> : vector<8xf32>
    %108 = vector.multi_reduction <maximumf>, %107, %cst_46 [1] : vector<8x8xf32> to vector<8xf32>
    %109 = vector.shape_cast %108 : vector<8xf32> to vector<8x1xf32>
    %110 = vector.broadcast %109 : vector<8x1xf32> to vector<8x8xf32>
    %111 = arith.subf %107, %110 : vector<8x8xf32>
    %112 = math.exp %111 : vector<8x8xf32>
    %cst_47 = arith.constant dense<0.000000e+00> : vector<8xf32>
    %113 = vector.multi_reduction <add>, %112, %cst_47 [1] : vector<8x8xf32> to vector<8xf32>
    %114 = vector.shape_cast %113 : vector<8xf32> to vector<8x1xf32>
    %115 = arith.truncf %112 : vector<8x8xf32> to vector<8x8xbf16>
    %cst_48 = arith.constant dense<0.000000e+00> : vector<8x128xf32>
    %116 = tpu.matmul %115, %105, %cst_48 {dimension_numbers = #tpu.dot_dimension_numbers<[1], [0], [0], [1], [0, 0, 1, 1], [], []>} : vector<8x8xbf16>, vector<8x128xbf16>, vector<8x128xf32> -> vector<8x128xf32>
    %117 = tpu.reciprocal %114 {approx = true} : vector<8x1xf32> -> vector<8x1xf32>
    %118 = vector.broadcast %117 : vector<8x1xf32> to vector<8x128xf32>
    %119 = arith.mulf %116, %118 : vector<8x128xf32>
    %120 = arith.truncf %119 : vector<8x128xf32> to vector<8x128xbf16>
    %c0_49 = arith.constant 0 : index
    %121 = arith.index_cast %99 : i32 to index
    %122 = vector.load %arg14[%c0_49, %121] : memref<8x512xbf16, #tpu.memory_space<vmem>>, vector<8x128xbf16>
    tpu.vector_store %arg14[%c0_49, %121], %120 {strides = array<i32>} : memref<8x512xbf16, #tpu.memory_space<vmem>>, vector<8x128xbf16>,
    %c4_i32 = arith.constant 4 : i32
    %c0_50 = arith.constant 0 : index
    %c0_51 = arith.constant 0 : index
    %123 = vector.load %arg14[%c0_50, %c0_51] : memref<8x512xbf16, #tpu.memory_space<vmem>>, vector<8x512xbf16>
    %c0_52 = arith.constant 0 : index
    %c0_53 = arith.constant 0 : index
    %124 = vector.load %arg9[%c0_52, %c0_53] : memref<512x32xbf16, #tpu.memory_space<vmem>>, vector<512x32xbf16>
    %cst_54 = arith.constant dense<0.000000e+00> : vector<8x32xf32>
    %125 = tpu.matmul %123, %124, %cst_54 {dimension_numbers = #tpu.dot_dimension_numbers<[1], [0], [0], [1], [0, 0, 1, 1], [], []>} : vector<8x512xbf16>, vector<512x32xbf16>, vector<8x32xf32> -> vector<8x32xf32>
    %cst_55 = arith.constant 0.000000e+00 : f32
    %126 = vector.shape_cast %22 : vector<8x1xi1> to vector<8x1xi1>
    %127 = vector.broadcast %126 : vector<8x1xi1> to vector<8x32xi1>
    %128 = vector.broadcast %cst_55 : f32 to vector<8x32xf32>
    %129 = arith.select %127, %125, %128 : vector<8x32xi1>, vector<8x32xf32>
    %c0_56 = arith.constant 0 : index
    %c0_57 = arith.constant 0 : index
    %c0_58 = arith.constant 0 : index
    %130 = vector.load %arg10[%c0_56, %c0_57, %c0_58] : memref<1x8x32xf32, #tpu.memory_space<vmem>>, vector<1x8x32xf32>
    %131 = vector.shape_cast %130 : vector<1x8x32xf32> to vector<8x32xf32>
    %132 = vector.shape_cast %129 : vector<8x32xf32> to vector<1x8x32xf32>
    tpu.vector_store %arg10[%c0_56, %c0_57, %c0_58], %132 {strides = array<i32>} : memref<1x8x32xf32, #tpu.memory_space<vmem>>, vector<1x8x32xf32>,
    return
  }
  func.func @transform_0(%arg0: i32, %arg1: i32) -> (i32, i32, i32) {
    %c0_i32 = arith.constant 0 : i32
    %c0_i32_0 = arith.constant 0 : i32
    return %arg0, %arg1, %c0_i32 : i32, i32, i32
  }
  func.func @transform_1(%arg0: i32, %arg1: i32) -> (i32, i32, i32) {
    %c0_i32 = arith.constant 0 : i32
    %c0_i32_0 = arith.constant 0 : i32
    %c0_i32_1 = arith.constant 0 : i32
    return %arg0, %c0_i32, %c0_i32_0 : i32, i32, i32
  }
  func.func @transform_2(%arg0: i32, %arg1: i32) -> (i32, i32, i32) {
    %c0_i32 = arith.constant 0 : i32
    %c0_i32_0 = arith.constant 0 : i32
    %c0_i32_1 = arith.constant 0 : i32
    return %arg0, %c0_i32, %c0_i32_0 : i32, i32, i32
  }
  func.func @transform_3(%arg0: i32, %arg1: i32) -> (i32, i32, i32) {
    %c0_i32 = arith.constant 0 : i32
    %c0_i32_0 = arith.constant 0 : i32
    return %arg0, %arg1, %c0_i32 : i32, i32, i32
  }
  func.func @transform_4(%arg0: i32, %arg1: i32) -> (i32, i32) {
    %c0_i32 = arith.constant 0 : i32
    %c0_i32_0 = arith.constant 0 : i32
    %c0_i32_1 = arith.constant 0 : i32
    return %c0_i32, %c0_i32_0 : i32, i32
  }
  func.func @transform_5(%arg0: i32, %arg1: i32) -> (i32, i32) {
    %c0_i32 = arith.constant 0 : i32
    %c0_i32_0 = arith.constant 0 : i32
    %c0_i32_1 = arith.constant 0 : i32
    return %c0_i32, %c0_i32_0 : i32, i32
  }
  func.func @transform_6(%arg0: i32, %arg1: i32) -> (i32, i32) {
    %c0_i32 = arith.constant 0 : i32
    %c0_i32_0 = arith.constant 0 : i32
    %c0_i32_1 = arith.constant 0 : i32
    return %c0_i32, %c0_i32_0 : i32, i32
  }
  func.func @transform_7(%arg0: i32, %arg1: i32) -> (i32, i32) {
    %c0_i32 = arith.constant 0 : i32
    %c0_i32_0 = arith.constant 0 : i32
    %c0_i32_1 = arith.constant 0 : i32
    return %c0_i32, %c0_i32_0 : i32, i32
  }
  func.func @transform_8(%arg0: i32, %arg1: i32) -> (i32, i32, i32) {
    %c0_i32 = arith.constant 0 : i32
    %c0_i32_0 = arith.constant 0 : i32
    return %arg0, %arg1, %c0_i32 : i32, i32, i32
  }
}

</mosaic_0001>

<bundles_post_ra>
// kernel: tpu_custom_call.1
= control target key start
LH: loop header
LB: loop body
LE: loop exit
PB: predicated region body
PF: predicated region fallthrough
CT: control target
= control target key end

     0   :  { %13 = vsyncpa [#allocation7], 0  ;;  %s2612_s0 = inlined_call_operand.vmem [shape: bf16[2,8,32], index: 0, kind: input, shape index: {}]   ;;  %s2613_s1 = inlined_call_operand.vmem [shape: bf16[2,8,32], index: 1, kind: input, shape index: {}]   ;;  %s2614_s2 = inlined_call_operand.vmem [shape: bf16[2,8,32], index: 2, kind: input, shape index: {}]   ;;  %s2615_s3 = inlined_call_operand.vmem [shape: s8[2,8,8], index: 3, kind: input, shape index: {}]   ;;  %s2616_s4 = inlined_call_operand.vmem [shape: bf16[32,512], index: 4, kind: input, shape index: {}]   ;;  %s2617_s5 = inlined_call_operand.vmem [shape: bf16[32,512], index: 5, kind: input, shape index: {}]   ;;  %s2618_s6 = inlined_call_operand.vmem [shape: bf16[32,512], index: 6, kind: input, shape index: {}]   ;;  %s2619_s7 = inlined_call_operand.vmem [shape: bf16[512,32], index: 7, kind: input, shape index: {}]   ;;  %s2620_s8 = inlined_call_operand.hbm [shape: f32[2,8,32], index: 8, kind: output, shape index: {}]  }
   0x1   :  { %15 = vsyncpa [#allocation7 + $0x1], 0  ;;  %s2254_s27 = smov 0   ;;  %s2256_s28 = smov 0  }
   0x2   :  { %s2258_s29 = smov 0   ;;  %s2260_s30 = smov 0  }
   0x3   :  { %s2262_s9 = smov 0   ;;  %s2264_s10 = smov 0  }
   0x4 LB: > { %s1773_s11 = sadd.s32 4294967295, %s2203_s10   ;;  %s1774_s12 = sadd.s32 4294967294, %s2203_s10   ;;  %s2203_s10 = sphi %s2264_s10, %s21_s10   ;;  %s2199_s9 = sphi %s2262_s9, %s2630_s9   ;;  %s2195_s30 = sphi %s2260_s30, %s2629_s30   ;;  %s2191_s29 = sphi %s2258_s29, %s2628_s29   ;;  %s2187_s28 = sphi %s2256_s28, %s2627_s28   ;;  %s2183_s27 = sphi %s2254_s27, %s2626_s27  }
   0x5   : > { %s33_s13 = sadd.s32 1, %s2199_s9  ;;  %s234_s14 = sadd.s32 1, %s2191_s29 }
   0x6   : > { %p35_p0 = scmp.ge.s32.totalorder %s33_s13, 2  ;;  %p244_p1 = scmp.ne.s32.totalorder %s2191_s29, %s2187_s28 }
   0x7   : > { %p245_p2 = scmp.eq.s32.totalorder %s1773_s11, 1  ;;  %p250_p3 = scmp.ne.s32.totalorder %s2187_s28, %s2183_s27 }
   0x8   : > { %s2632_s13 = smov (%p35_p0, %s33_s13), 0  ;;  %p251_p5 = scmp.eq.s32.totalorder %s1774_s12, 1 }
   0x9   : > { %2622 = sst [smem:[#allocation9_spill]] %s2632_s13  ;;  %p2294_p4 = por %p245_p2, %p244_p1 }
   0xa   : > { %s229_s16 = ssub.s32 %s2199_s9, %s2632_s13  ;;  %p1777_p6 = scmp.ge.s32.totalorder %s2203_s10, 1 }
   0xb   : > { %p232_p7 = scmp.eq.s32.totalorder %s229_s16, 0  ;;  %p2301_p8 = por %p251_p5, %p250_p3 }
   0xc   : > { %p315_p9 = scmp.lt.s32.totalorder %s2203_s10, 3 }
   0xd   : > { %s2307_s18 = scalar_select %p232_p7, %s2191_s29, %s234_s14  }
   0xe   : > { %p316_p10 = pnand %p1777_p6, %p315_p9 }
   0xf   : > { %v2037_v0 = vld [vmem:[%s2617_s5 + $0x4] ss:$16 sps:$4 sm:$0xff] (!%p316_p10)   ;;  %p366_p11 = scmp.lt.s32.totalorder (!%p316_p10), %s2195_s30, 1  ;;  %v2039_v1 = vld [vmem:[%s2617_s5] ss:$16 sps:$4 sm:$0xff] (!%p316_p10)   ;;  %v2205_v2 = vmov (!%p316_p10), 0  }
  0x10   : > { %319 = sbr.rel (%p316_p10) target bundleno = 1124 (0x464), region = 52  ;;  %480 = vmatprep.mubr.bf16.mxu0 (!%p316_p10), %v2205_v2  ;;  %521 = vmatprep.mubr.bf16.mxu1 (!%p316_p10), %v2205_v2  ;;  %v2040_v3 = vld [vmem:[%s2617_s5 + $0x24] ss:$16 sps:$4 sm:$0xff] (!%p316_p10)   ;;  %v2042_v4 = vld [vmem:[%s2617_s5 + $0x20] ss:$16 sps:$4 sm:$0xff] (!%p316_p10)   ;;  %vm444_vm0 = vcmask (!%p316_p10), 261120  }
  0x11   : > { %448 = vmatprep.subr.bf16.mxu0 (!%p316_p10), %v2037_v0  ;;  %v2045_v5 = vld [vmem:[%s2618_s6 + $0x4] ss:$16 sps:$4 sm:$0xff] (!%p316_p10)   ;;  %v2043_v6 = vld [vmem:[%s2618_s6] ss:$16 sps:$4 sm:$0xff] (!%p316_p10)   ;;  %v2049_v7 = vld [vmem:[%s2617_s5 + $0xc] ss:$16 sps:$4 sm:$0xff] (!%p316_p10)  }
  0x12   : > { %449 = vmatpush1.bf16.msra.mxu0 (!%p316_p10), %v2039_v1  ;;  %v2051_v9 = vld [vmem:[%s2617_s5 + $0x8] ss:$16 sps:$4 sm:$0xff] (!%p316_p10)   ;;  %v2048_v10 = vld [vmem:[%s2618_s6 + $0x24] ss:$16 sps:$4 sm:$0xff] (!%p316_p10)   ;;  %489 = vmatprep.subr.bf16.mxu1 (!%p316_p10), %v2049_v7  ;;  %v2055_v11 = vld [vmem:[%s2617_s5 + $0x2c] ss:$16 sps:$4 sm:$0xff] (!%p316_p10)  }
  0x13   : > { %450 = vmatprep.subr.bf16.mxu0 (!%p316_p10), %v2040_v3  ;;  %490 = vmatpush1.bf16.msra.mxu1 (!%p316_p10), %v2051_v9  ;;  %v2057_v12 = vld [vmem:[%s2617_s5 + $0x28] ss:$16 sps:$4 sm:$0xff] (!%p316_p10)   ;;  %v2046_v13 = vld [vmem:[%s2618_s6 + $0x20] ss:$16 sps:$4 sm:$0xff] (!%p316_p10)   ;;  %v2054_v14 = vld [vmem:[%s2616_s4 + $0x4] ss:$16 sps:$4 sm:$0xff] (!%p316_p10)  }
  0x14   : > { %491 = vmatprep.subr.bf16.mxu1 (!%p316_p10), %v2055_v11  ;;  %v2063_v15 = vld [vmem:[%s2618_s6 + $0xc] ss:$16 sps:$4 sm:$0xff] (!%p316_p10)   ;;  %v2061_v16 = vld [vmem:[%s2618_s6 + $0x8] ss:$16 sps:$4 sm:$0xff] (!%p316_p10)   ;;  %v2052_v19 = vld [vmem:[%s2616_s4] ss:$16 sps:$4 sm:$0xff] (!%p316_p10)  }
  0x15   : > { %v2066_v18 = vld [vmem:[%s2618_s6 + $0x2c] ss:$16 sps:$4 sm:$0xff] (!%p316_p10)   ;;  %v2060_v20 = vld [vmem:[%s2616_s4 + $0x24] ss:$16 sps:$4 sm:$0xff] (!%p316_p10)   ;;  %v2064_v21 = vld [vmem:[%s2618_s6 + $0x28] ss:$16 sps:$4 sm:$0xff] (!%p316_p10)  }
  0x16   : > { %451 = vmatpush1.bf16.msra.mxu0 (!%p316_p10), %v2042_v4  ;;  %v2058_v22 = vld [vmem:[%s2616_s4 + $0x20] ss:$16 sps:$4 sm:$0xff] (!%p316_p10)   ;;  %v2069_v23 = vld [vmem:[%s2616_s4 + $0xc] ss:$16 sps:$4 sm:$0xff] (!%p316_p10)   ;;  %v2067_v24 = vld [vmem:[%s2616_s4 + $0x8] ss:$16 sps:$4 sm:$0xff] (!%p316_p10)  }
  0x17   : > { %s2322_s25 = scalar_select %p366_p11, %s2195_s30, 1  ;;  %600 = vmatprep.subr.bf16.mxu0 %v2045_v5  ;;  %492 = vmatpush1.bf16.msra.mxu1 %v2057_v12  ;;  %v2072_v25 = vld [vmem:[%s2616_s4 + $0x2c] ss:$16 sps:$4 sm:$0xff]   ;;  %v2070_v27 = vld [vmem:[%s2616_s4 + $0x28] ss:$16 sps:$4 sm:$0xff]   ;;  %v2206_v28 = vmov 0.0  }
  0x18   : > { %641 = vmatprep.subr.bf16.mxu1 %v2063_v15  ;;  %vm2207_vm1 = vmmov 0   ;;  %vm923_vm2 = vcmask 1043456   ;;  %vm862_vm5 = vcmask 64512   ;;  %s1862_s24 = sshll.u32 %s2195_s30, 7  ;;  %s2208_s13 = smov [#allocation6]  }
  0x19   : > { %s2328_s12 = sshll.u32 %s2322_s25, 2  ;;  %s2564_s20 = scalar_lea.hbm %s2620_s8, %s1862_s24 }
  0x1a   : > { %s376_s21 = scalar_lea.vmem %s2613_s1, %s2328_s12  ;;  %s380_s11 = scalar_lea.vmem %s2614_s2, %s2328_s12 }
  0x1b   : > { %v395_v8 = vld [vmem:[%s376_s21] sm:$0xf]  ;;  %s372_s26 = scalar_lea.vmem %s2612_s0, %s2328_s12  ;;  %s1782_s12 = sshll.u32 %s2322_s25, 1 }
  0x1c   : > { %1791 = vmatmul.mubr.msk.bf16.vlgmr.msra.gmra.mrb[0].mxu0 %vm444_vm0, %v395_v8  ;;  %v548_v17 = vld [vmem:[%s380_s11] sm:$0xf]  ;;  %1792 = vmatmul.mubr.msk.bf16.vlgmr.msra.gmra.mrb[0].mxu1 %vm444_vm0, %v395_v8  ;;  %s387_s23 = scalar_lea.vmem %s2615_s3, %s1782_s12  ;;  %s2129_s12 = sshll.u32 %s2208_s13, 4  ;;  %s2130_s12 = int_to_ptr.vmem [resolvable:$false] %s2129_s12 }
  0x1d   : > { %601 = vmatpush1.bf16.msra.mxu0 %v2043_v6  ;;  %632 = vmatprep.mubr.bf16.mxu0 %v2205_v2  ;;  %v700_v26 = vld [vmem:[%s372_s26] sm:$0xf]  ;;  %s2131_s21 = scalar_lea.vmem %s2130_s12, 256 }
  0x1e   : > { %602 = vmatprep.subr.bf16.mxu0 %v2048_v10  ;;  %642 = vmatpush1.bf16.msra.mxu1 %v2061_v16  ;;  %v853_v6 = vld [vmem:[%s387_s23] sm:$0x3]  ;;  %s363_s23 = sand.u32 1, %s2187_s28  }
  0x1f   : > { %673 = vmatprep.mubr.bf16.mxu1 %v2205_v2  ;;  %643 = vmatprep.subr.bf16.mxu1 %v2066_v18  ;;  %vm854_vm3 = vnez %v853_v6  ;;  %v2077_v6 = vld [vmem:[%s2619_s7 + $0x50] sm:$0xff]   ;;  %s1778_s25 = sshll.u32 %s363_s23, 3  ;;  %s1649_s11 = scalar_lea.sflag [#allocation7], %s363_s23 }
  0x20   : > { %v855_v7 = vsel %vm854_vm3, 16843009, %v2205_v2  ;;  %s365_s26 = scalar_lea.vmem [#allocation6], %s1778_s25 }
  0x21   : > { %603 = vmatpush1.bf16.msra.mxu0 %v2046_v13  ;;  %v856_v8 = vunpack.c.0.s8 %v855_v7  ;;  %v2078_v7 = vld [vmem:[%s2619_s7 + $0x10] sm:$0xff]   ;;  %s1663_s14 = sshll.u32 %s365_s26, 4  ;;  %s2566_s14 = int_to_ptr.vmem [resolvable:$true] %s1663_s14 }
  0x22   : > { %753 = vmatprep.subr.bf16.mxu0 %v2054_v14  ;;  %644 = vmatpush1.bf16.msra.mxu1 %v2064_v21  ;;  %s2125_s30 = scalar_lea.vmem %s2566_s14, 128  ;;  %p2132_p1 = scmp.lt.s32.totalorder %s2566_s14, %s2130_s12 }
  0x23   : > { %794 = vmatprep.subr.bf16.mxu1 %v2069_v23  ;;  %vm857_vm4 = vcmp.ne.s32.totalorder %v856_v8, 0  ;;  %v2079_v8 = vld [vmem:[%s2619_s7 + $0x58] sm:$0xff]   ;;  %p2126_p12 = scmp.ne.s32.totalorder %s2566_s14, %s2125_s30  ;;  %p2133_p2 = scmp.lt.s32.totalorder %s2131_s21, %s2125_s30 }
  0x24   : > { %1803 = vmatmul.mubr.msk.bf16.vlgmr.msra.gmra.mrb[4].mxu0 %vm444_vm0, %v548_v17  ;;  %v2435_v9 = vsel %vm857_vm4, 1.0, %v2206_v28 }
  0x25   : > { %754 = vmatpush1.bf16.msra.mxu0 %v2052_v19  ;;  %785 = vmatprep.mubr.bf16.mxu0 %v2205_v2  ;;  %v1820_v10 = vadd.f32 -1.0, %v2435_v9  ;;  %p2127_p13 = pnand %p2126_p12, %p2294_p4  ;;  %p2134_p3 = por %p2133_p2, %p2132_p1 }
  0x26   : > { %755 = vmatprep.subr.bf16.mxu0 %v2060_v20  ;;  %1804 = vmatmul.mubr.msk.bf16.vlgmr.msra.gmra.mrb[4].mxu1 %vm444_vm0, %v548_v17 }
  0x27   : > { %795 = vmatpush1.bf16.msra.mxu1 %v2067_v24  ;;  %826 = vmatprep.mubr.bf16.mxu1 %v2205_v2  ;;  %v861_v11 = vmul.f32 1e+09, %v1820_v10  ;;  %v2080_v10 = vld [vmem:[%s2619_s7 + $0x18] sm:$0xff]   ;;  %p2128_p0 = pneg %p2127_p13 }
  0x28   : > { %796 = vmatprep.subr.bf16.mxu1 %v2072_v25 }
  0x29   : > { %756 = vmatpush1.bf16.msra.mxu0 %v2058_v22  ;;  %p2135_p5 = pnand %p2134_p3, %p2128_p0 }
  0x2a   : > { %1931 = vmatprep.subr.bf16.mxu0 %v2206_v28 }
  0x2b   : > { %797 = vmatpush1.bf16.msra.mxu1 %v2070_v27 }
  0x2c   : > { %1815 = vmatmul.mubr.msk.bf16.vlgmr.msra.gmra.mrb[8].mxu0 %vm444_vm0, %v700_v26  ;;  %1937 = vmatprep.subr.bf16.mxu1 %v2206_v28 }
  0x2d   : > { %1933 = vmatprep.mubr.msk.bf16.mxu0 %vm2207_vm1, %v2206_v28 }
  0x2e   : > { %1816 = vmatmul.mubr.msk.bf16.vlgmr.msra.gmra.mrb[8].mxu1 %vm444_vm0, %v700_v26 }
  0x2f   : > { %1939 = vmatprep.mubr.msk.bf16.mxu1 %vm2207_vm1, %v2206_v28 }
  0xef   : > { %v482_v29 = vpop.f32.mrb[0].mxu0  ;;  %v523_v34 = vpop.f32.mrb[0].mxu1 }
  0xf0   : > { %v484_v30 = vpop.f32.mrb[1].mxu0  ;;  %v525_v35 = vpop.f32.mrb[1].mxu1 }
  0xf1   : > { %v1865_v31 = vpack.c.bf16 %v484_v30, %v482_v29  ;;  %v486_v32 = vpop.f32.mrb[2].mxu0  ;;  %v1866_v37 = vpack.c.bf16 %v525_v35, %v523_v34  ;;  %v527_v38 = vpop.f32.mrb[2].mxu1 }
  0xf2   : > { %v487_v33 = vpop.f32.mrb[3].mxu0  ;;  %v528_v40 = vpop.f32.mrb[3].mxu1 }
  0xf3   : > { %546 = vst [vmem:[#allocation2] sm:$0xff] %v1865_v31  ;;  %547 = vst [vmem:[#allocation2 + $0x8] sm:$0xff] %v1866_v37 }
  0xf7   : > { %v634_v36 = vpop.f32.mrb[4].mxu0 }
  0xf8   : > { %v636_v39 = vpop.f32.mrb[5].mxu0 }
  0xf9   : > { %v1867_v41 = vpack.c.bf16 %v636_v39, %v634_v36  ;;  %v638_v42 = vpop.f32.mrb[6].mxu0  ;;  %v675_v45 = vpop.f32.mrb[4].mxu1 }
  0xfa   : > { %v639_v43 = vpop.f32.mrb[7].mxu0  ;;  %v868_v44 = vld [vmem:[#allocation2] sm:$0xf]  ;;  %v677_v46 = vpop.f32.mrb[5].mxu1  ;;  %v974_v63 = vld [vmem:[#allocation2 + $0x4] sm:$0xf] }
  0xfb   : > { %698 = vst [vmem:[#allocation3] sm:$0xff] %v1867_v41  ;;  %1932 = vmatpush3.bf16.xpose.msra.mxu0 %v868_v44  ;;  %v1868_v48 = vpack.c.bf16 %v677_v46, %v675_v45  ;;  %v679_v49 = vpop.f32.mrb[6].mxu1  ;;  %v1081_v1 = vld [vmem:[#allocation2 + $0x8] sm:$0xf]  ;;  %v1188_v4 = vld [vmem:[#allocation2 + $0xc] sm:$0xf] }
  0xfc   : > { %1943 = vmatprep.subr.bf16.mxu0 %v2206_v28  ;;  %v680_v51 = vpop.f32.mrb[7].mxu1 }
  0xfd   : > { %699 = vst [vmem:[#allocation3 + $0x8] sm:$0xff] %v1868_v48 }
  0xff   : > { %v787_v47 = vpop.f32.mrb[8].mxu0 }
 0x100   : > { %v789_v50 = vpop.f32.mrb[9].mxu0 }
 0x101   : > { %v1869_v52 = vpack.c.bf16 %v789_v50, %v787_v47  ;;  %v791_v53 = vpop.f32.mrb[10].mxu0  ;;  %v828_v57 = vpop.f32.mrb[8].mxu1 }
 0x102   : > { %v792_v54 = vpop.f32.mrb[11].mxu0  ;;  %v869_v55 = vld [vmem:[#allocation3] sm:$0xf]  ;;  %v830_v58 = vpop.f32.mrb[9].mxu1  ;;  %v976_v43 = vld [vmem:[#allocation3 + $0x4] sm:$0xf] }
 0x103   : > { %851 = vst [vmem:[#allocation4] sm:$0xff] %v1869_v52  ;;  %v925_v56 = vsel %vm923_vm2, %v869_v55, 0  ;;  %v1870_v59 = vpack.c.bf16 %v830_v58, %v828_v57  ;;  %v832_v60 = vpop.f32.mrb[10].mxu1  ;;  %v1031_v48 = vsel %vm923_vm2, %v976_v43, 0 }
 0x104   : > { %1938 = vmatpush3.bf16.msra.mxu1 %v925_v56  ;;  %v833_v61 = vpop.f32.mrb[11].mxu1  ;;  %v1083_v51 = vld [vmem:[#allocation3 + $0x8] sm:$0xf] }
 0x105   : > { %1949 = vmatprep.subr.bf16.mxu1 %v2206_v28  ;;  %852 = vst [vmem:[#allocation4 + $0x8] sm:$0xff] %v1870_v59  ;;  %v1138_v56 = vsel %vm923_vm2, %v1083_v51, 0  ;;  %v1190_v59 = vld [vmem:[#allocation3 + $0xc] sm:$0xf] }
 0x10a   : > { %v867_v62 = vld [vmem:[#allocation4] sm:$0xf]  ;;  %v972_v0 = vld [vmem:[#allocation4 + $0x4] sm:$0xf] }
 0x10b   : > { %1934 = vmatmul.mubr.bf16.vlgmr.msra.gmra.mrb[12].mxu0 %v867_v62  ;;  %v1245_v62 = vsel %vm923_vm2, %v1190_v59, 0 }
 0x10c   : > { %1944 = vmatpush3.bf16.xpose.msra.mxu0 %v974_v63  ;;  %1945 = vmatprep.mubr.msk.bf16.mxu0 %vm2207_vm1, %v2206_v28  ;;  %v1079_v3 = vld [vmem:[#allocation4 + $0x8] sm:$0xf]  ;;  %v1186_v5 = vld [vmem:[#allocation4 + $0xc] sm:$0xf] }
 0x10d   : > { %1955 = vmatprep.subr.bf16.mxu0 %v2206_v28 }
 0x113   : > { %1946 = vmatmul.mubr.bf16.vlgmr.msra.gmra.mrb[16].mxu0 %v972_v0 }
 0x114   : > { %1956 = vmatpush3.bf16.xpose.msra.mxu0 %v1081_v1  ;;  %1957 = vmatprep.mubr.msk.bf16.mxu0 %vm2207_vm1, %v2206_v28 }
 0x115   : > { %1967 = vmatprep.subr.bf16.mxu0 %v2206_v28 }
 0x11b   : > { %1958 = vmatmul.mubr.bf16.vlgmr.msra.gmra.mrb[20].mxu0 %v1079_v3  ;;  %v2073_v3 = vld [vmem:[%s2619_s7 + $0x40] sm:$0xff]  }
 0x11c   : > { %1968 = vmatpush3.bf16.xpose.msra.mxu0 %v1188_v4  ;;  %1969 = vmatprep.mubr.msk.bf16.mxu0 %vm2207_vm1, %v2206_v28  ;;  %v2074_v4 = vld [vmem:[%s2619_s7] sm:$0xff]  }
 0x11d   : > { %1887 = vmatprep.subr.bf16.mxu0 %v2073_v3 }
 0x123   : > { %1970 = vmatmul.mubr.bf16.vlgmr.msra.gmra.mrb[24].mxu0 %v1186_v5  ;;  %v2075_v5 = vld [vmem:[%s2619_s7 + $0x48] sm:$0xff]  }
 0x124   : > { %1888 = vmatpush3.bf16.msra.mxu0 %v2074_v4 }
 0x125   : > { %1889 = vmatprep.subr.bf16.mxu0 %v2075_v5 }
 0x1de   : > { %v904_v12 = vpop.f32.mrb[12].mxu0 }
 0x1df   : > { %v905_v13 = vadd.f32 %v904_v12, %v861_v11  ;;  %v1935_v14 = vpop.f32.mrb[13].mxu0  ;;  %v2082_v12 = vld [vmem:[%s2619_s7 + $0xc0] sm:$0xff]  }
 0x1e0   : > { %v907_v15 = vpop.f32.mrb[14].mxu0  ;;  %v2084_v14 = vld [vmem:[%s2619_s7 + $0x80] sm:$0xff]  }
 0x1e1   : > { %v1936_v16 = vpop.f32.mrb[15].mxu0  ;;  %v910_v17 = vsel %vm862_vm5, %v905_v13, -inf  ;;  %v2085_v15 = vld [vmem:[%s2619_s7 + $0x68] sm:$0xff]  }
 0x1e2   : > { %911 = vmax.xlane.f32.xlu0 %v910_v17  ;;  %v2086_v16 = vld [vmem:[%s2619_s7 + $0xc8] sm:$0xff]  }
 0x1e3   : > { %v2087_v17 = vld [vmem:[%s2619_s7 + $0x28] sm:$0xff]  }
 0x1e6   : > { %v1011_v18 = vpop.f32.mrb[16].mxu0 }
 0x1e7   : > { %v1012_v19 = vadd.f32 %v1011_v18, %v861_v11  ;;  %v1947_v2 = vpop.f32.mrb[17].mxu0  ;;  %v2088_v18 = vld [vmem:[%s2619_s7 + $0x88] sm:$0xff]  }
 0x1e8   : > { %v1014_v20 = vpop.f32.mrb[18].mxu0  ;;  %v2090_v2 = vld [vmem:[%s2619_s7 + $0xd0] sm:$0xff]  }
 0x1e9   : > { %v1948_v21 = vpop.f32.mrb[19].mxu0  ;;  %v1017_v22 = vsel %vm862_vm5, %v1012_v19, -inf  ;;  %v2091_v20 = vld [vmem:[%s2619_s7 + $0x30] sm:$0xff]  }
 0x1ea   : > { %1018 = vmax.xlane.f32.xlu0 %v1017_v22  ;;  %v2092_v21 = vld [vmem:[%s2619_s7 + $0x90] sm:$0xff]   ;;  %v2093_v22 = vld [vmem:[%s2619_s7 + $0x78] sm:$0xff]  }
 0x1ee   : > { %v1118_v23 = vpop.f32.mrb[20].mxu0 }
 0x1ef   : > { %v1119_v24 = vadd.f32 %v1118_v23, %v861_v11  ;;  %v1959_v25 = vpop.f32.mrb[21].mxu0  ;;  %v2094_v23 = vld [vmem:[%s2619_s7 + $0xd8] sm:$0xff]  }
 0x1f0   : > { %v1121_v26 = vpop.f32.mrb[22].mxu0  ;;  %v2096_v25 = vld [vmem:[%s2619_s7 + $0x98] sm:$0xff]  }
 0x1f1   : > { %v1960_v27 = vpop.f32.mrb[23].mxu0  ;;  %v1124_v29 = vsel %vm862_vm5, %v1119_v24, -inf  ;;  %v2099_v26 = vld [vmem:[%s2619_s7 + $0xe0] sm:$0xff]  }
 0x1f2   : > { %1125 = vmax.xlane.f32.xlu1 %v1124_v29  ;;  %v2100_v27 = vld [vmem:[%s2619_s7 + $0xa0] sm:$0xff]   ;;  %v2101_v29 = vld [vmem:[%s2619_s7 + $0xe8] sm:$0xff]  }
 0x1f6   : > { %v1225_v30 = vpop.f32.mrb[24].mxu0 }
 0x1f7   : > { %v1226_v31 = vadd.f32 %v1225_v30, %v861_v11  ;;  %v1971_v32 = vpop.f32.mrb[25].mxu0  ;;  %v2081_v11 = vld [vmem:[%s2619_s7 + $0x60] sm:$0xff]   ;;  %v2102_v30 = vld [vmem:[%s2619_s7 + $0xa8] sm:$0xff]  }
 0x1f8   : > { %v1228_v33 = vpop.f32.mrb[26].mxu0  ;;  %v2104_v32 = vld [vmem:[%s2619_s7 + $0xb0] sm:$0xff]  }
 0x1f9   : > { %v1972_v34 = vpop.f32.mrb[27].mxu0  ;;  %v1231_v35 = vsel %vm862_vm5, %v1226_v31, -inf  ;;  %v2105_v33 = vld [vmem:[%s2619_s7 + $0xf8] sm:$0xff]  }
 0x1fa   : > { %1232 = vmax.xlane.f32.xlu1 %v1231_v35  ;;  %v2106_v34 = vld [vmem:[%s2619_s7 + $0xb8] sm:$0xff]   ;;  %v863_v35 = vsel %vm862_vm5, %v2435_v9, -inf }
 0x26f   : > { %v912_v36 = vpop.xlane.xlu0 %911 }
 0x270   : > { %v913_v37 = vsub.f32 %v905_v13, %v912_v36  ;;  %v2083_v13 = vld [vmem:[%s2619_s7 + $0x20] sm:$0xff]  }
 0x272   : > { %v914_v38 = vmul.f32 1.442695, %v913_v37 }
 0x274   : > { %2109 = vpow2.f32 %v914_v38 }
 0x277   : > { %v1019_v39 = vpop.xlane.xlu0 %1018 }
 0x278   : > { %v1020_v40 = vsub.f32 %v1012_v19, %v1019_v39  ;;  %v2089_v19 = vld [vmem:[%s2619_s7 + $0x70] sm:$0xff]  }
 0x27a   : > { %v1021_v41 = vmul.f32 1.442695, %v1020_v40 }
 0x27c   : > { %2111 = vpow2.f32 %v1021_v41 }
 0x27e   : > { %v2110_v42 = vpop.eup %2109 }
 0x27f   : > { %v1126_v44 = vpop.xlane.xlu1 %1125  ;;  %v916_v45 = vsel %vm862_vm5, %v2110_v42, 0.0  ;;  %v919_v46 = vpack.c.bf16 %v2110_v42, %v2110_v42 }
 0x280   : > { %v1127_v47 = vsub.f32 %v1119_v24, %v1126_v44  ;;  %917 = vadd.xlane.f32.xlu0 %v916_v45  ;;  %v2095_v24 = vld [vmem:[%s2619_s7 + $0x38] sm:$0xff]  }
 0x281   : > { %1940 = vmatmul.mubr.msk.bf16.vlgmr.msra.gmra.mrb[12].mxu1 %vm862_vm5, %v919_v46 }
 0x282   : > { %v1128_v49 = vmul.f32 1.442695, %v1127_v47  ;;  %1950 = vmatpush3.bf16.msra.mxu1 %v1031_v48  ;;  %1951 = vmatprep.mubr.msk.bf16.mxu1 %vm2207_vm1, %v2206_v28 }
 0x283   : > { %1961 = vmatprep.subr.bf16.mxu1 %v2206_v28 }
 0x284   : > { %2113 = vpow2.f32 %v1128_v49 }
 0x286   : > { %v2112_v50 = vpop.eup %2111 }
 0x287   : > { %v1233_v52 = vpop.xlane.xlu1 %1232  ;;  %v1023_v53 = vsel %vm862_vm5, %v2112_v50, 0.0  ;;  %v1026_v54 = vpack.c.bf16 %v2112_v50, %v2112_v50 }
 0x288   : > { %v1234_v55 = vsub.f32 %v1226_v31, %v1233_v52  ;;  %1024 = vadd.xlane.f32.xlu1 %v1023_v53  ;;  %v2103_v31 = vld [vmem:[%s2619_s7 + $0xf0] sm:$0xff]  }
 0x289   : > { %1952 = vmatmul.mubr.msk.bf16.vlgmr.msra.gmra.mrb[16].mxu1 %vm862_vm5, %v1026_v54 }
 0x28a   : > { %v1235_v57 = vmul.f32 1.442695, %v1234_v55  ;;  %1962 = vmatpush3.bf16.msra.mxu1 %v1138_v56  ;;  %1963 = vmatprep.mubr.msk.bf16.mxu1 %vm2207_vm1, %v2206_v28 }
 0x28b   : > { %1973 = vmatprep.subr.bf16.mxu1 %v2206_v28 }
 0x28c   : > { %2115 = vpow2.f32 %v1235_v57 }
 0x28e   : > { %v2114_v58 = vpop.eup %2113 }
 0x28f   : > { %v1130_v60 = vsel %vm862_vm5, %v2114_v58, 0.0  ;;  %v1133_v61 = vpack.c.bf16 %v2114_v58, %v2114_v58 }
 0x290   : > { %1131 = vadd.xlane.f32.xlu0 %v1130_v60 }
 0x291   : > { %1964 = vmatmul.mubr.msk.bf16.vlgmr.msra.gmra.mrb[20].mxu1 %vm862_vm5, %v1133_v61 }
 0x292   : > { %1974 = vmatpush3.bf16.msra.mxu1 %v1245_v62  ;;  %1975 = vmatprep.mubr.msk.bf16.mxu1 %vm2207_vm1, %v2206_v28  ;;  %v2076_v28 = vld [vmem:[%s2619_s7 + $0x8] sm:$0xff]  }
 0x293   : > { %1890 = vmatpush3.bf16.msra.mxu0 %v2076_v28  ;;  %1909 = vmatprep.subr.bf16.mxu1 %v2082_v12 }
 0x294   : > { %1891 = vmatprep.subr.bf16.mxu0 %v2077_v6  ;;  %864 = vmax.xlane.f32.xlu0 %v863_v35 }
 0x296   : > { %v2116_v63 = vpop.eup %2115 }
 0x297   : > { %v1237_v0 = vsel %vm862_vm5, %v2116_v63, 0.0  ;;  %v1240_v1 = vpack.c.bf16 %v2116_v63, %v2116_v63  ;;  %1892 = vmatpush3.bf16.msra.mxu0 %v2078_v7 }
 0x298   : > { %1238 = vadd.xlane.f32.xlu1 %v1237_v0  ;;  %1893 = vmatprep.subr.bf16.mxu0 %v2079_v8 }
 0x299   : > { %1976 = vmatmul.mubr.msk.bf16.vlgmr.msra.gmra.mrb[24].mxu1 %vm862_vm5, %v1240_v1 }
 0x29a   : > { %1910 = vmatpush3.bf16.msra.mxu1 %v2084_v14 }
 0x29b   : > { %1894 = vmatpush3.bf16.msra.mxu0 %v2080_v10  ;;  %1911 = vmatprep.subr.bf16.mxu1 %v2086_v16 }
 0x29c   : > { %1895 = vmatprep.subr.bf16.mxu0 %v2081_v11 }
 0x29e   : > { %1912 = vmatpush3.bf16.msra.mxu1 %v2088_v18 }
 0x29f   : > { %1896 = vmatpush3.bf16.msra.mxu0 %v2083_v13  ;;  %1913 = vmatprep.subr.bf16.mxu1 %v2090_v2 }
 0x2a0   : > { %1897 = vmatprep.subr.bf16.mxu0 %v2085_v15 }
 0x2a2   : > { %1914 = vmatpush3.bf16.msra.mxu1 %v2092_v21 }
 0x2a3   : > { %1898 = vmatpush3.bf16.msra.mxu0 %v2087_v17  ;;  %1915 = vmatprep.subr.bf16.mxu1 %v2094_v23 }
 0x2a4   : > { %1899 = vmatprep.subr.bf16.mxu0 %v2089_v19 }
 0x2a6   : > { %1916 = vmatpush3.bf16.msra.mxu1 %v2096_v25 }
 0x2a7   : > { %1900 = vmatpush3.bf16.msra.mxu0 %v2091_v20  ;;  %1917 = vmatprep.subr.bf16.mxu1 %v2099_v26 }
 0x2a8   : > { %1901 = vmatprep.subr.bf16.mxu0 %v2093_v22 }
 0x2aa   : > { %1918 = vmatpush3.bf16.msra.mxu1 %v2100_v27 }
 0x2ab   : > { %1902 = vmatpush3.bf16.msra.mxu0 %v2095_v24  ;;  %1919 = vmatprep.subr.bf16.mxu1 %v2101_v29 }
 0x2ae   : > { %1920 = vmatpush3.bf16.msra.mxu1 %v2102_v30 }
 0x2af   : > { %1921 = vmatprep.subr.bf16.mxu1 %v2103_v31 }
 0x2b2   : > { %1922 = vmatpush3.bf16.msra.mxu1 %v2104_v32 }
 0x2b3   : > { %1923 = vmatprep.subr.bf16.mxu1 %v2105_v33 }
 0x2b6   : > { %1924 = vmatpush3.bf16.msra.mxu1 %v2106_v34 }
 0x30d   : > { %v918_v36 = vpop.xlane.xlu0 %917 }
 0x30e   : > { %2117 = vrcp.f32 %v918_v36 }
 0x315   : > { %v1025_v37 = vpop.xlane.xlu1 %1024 }
 0x316   : > { %2119 = vrcp.f32 %v1025_v37 }
 0x318   : > { %v2118_v38 = vpop.eup %2117 }
 0x31d   : > { %v1132_v43 = vpop.xlane.xlu0 %1131 }
 0x31e   : > { %2121 = vrcp.f32 %v1132_v43 }
 0x320   : > { %v2120_v46 = vpop.eup %2119 }
 0x321   : > { %v865_v16 = vpop.xlane.xlu0 %864 }
 0x322   : > { %vm866_vm6 = vcmp.gt.f32.partialorder %v865_v16, 0.0 }
 0x325   : > { %v1239_v50 = vpop.xlane.xlu1 %1238 }
 0x326   : > { %2123 = vrcp.f32 %v1239_v50 }
 0x328   : > { %v2122_v53 = vpop.eup %2121 }
 0x330   : > { %v2124_v63 = vpop.eup %2123 }
 0x354   : > { %v961_v39 = vpop.f32.mrb[12].mxu1 }
 0x355   : > { %v968_v40 = vmul.f32 %v2118_v38, %v961_v39  ;;  %v1941_v41 = vpop.f32.mrb[13].mxu1 }
 0x356   : > { %v964_v42 = vpop.f32.mrb[14].mxu1 }
 0x357   : > { %v969_v44 = vpack.c.bf16 %v968_v40, %v968_v40  ;;  %v1942_v45 = vpop.f32.mrb[15].mxu1 }
 0x359   : > { %970 = vst [vmem:[#allocation5] sm:$0xf] %v969_v44 }
 0x35c   : > { %v1067_v47 = vpop.f32.mrb[16].mxu1 }
 0x35d   : > { %v1074_v48 = vmul.f32 %v2120_v46, %v1067_v47  ;;  %v1953_v49 = vpop.f32.mrb[17].mxu1 }
 0x35e   : > { %v1070_v9 = vpop.f32.mrb[18].mxu1 }
 0x35f   : > { %v1075_v51 = vpack.c.bf16 %v1074_v48, %v1074_v48  ;;  %v1954_v52 = vpop.f32.mrb[19].mxu1 }
 0x361   : > { %1077 = vst [vmem:[#allocation5 + $0x4] sm:$0xf] %v1075_v51 }
 0x364   : > { %v1174_v54 = vpop.f32.mrb[20].mxu1 }
 0x365   : > { %v1181_v55 = vmul.f32 %v2122_v53, %v1174_v54  ;;  %v1965_v56 = vpop.f32.mrb[21].mxu1 }
 0x366   : > { %v1177_v57 = vpop.f32.mrb[22].mxu1 }
 0x367   : > { %v1182_v58 = vpack.c.bf16 %v1181_v55, %v1181_v55  ;;  %v1966_v59 = vpop.f32.mrb[23].mxu1 }
 0x368   : > { %v1292_v60 = vld [vmem:[#allocation5] sm:$0xff] }
 0x369   : > { %1184 = vst [vmem:[#allocation5 + $0x8] sm:$0xf] %v1182_v58  ;;  %v1825_v61 = vcombine.low %v1292_v60, %v1292_v60  ;;  %v1826_v62 = vcombine.high %v1292_v60, %v1292_v60 }
 0x36b   : > { %1596 = vmatprep.mubr.bf16.mxu0 %v1826_v62 }
 0x36c   : > { %v1281_v0 = vpop.f32.mrb[24].mxu1  ;;  %1597 = vmatmul.mubr.bf16.vlgmr.msra.gmra.mrb[28].mxu0 %v1825_v61 }
 0x36d   : > { %v1288_v1 = vmul.f32 %v2124_v63, %v1281_v0  ;;  %v1977_v3 = vpop.f32.mrb[25].mxu1 }
 0x36e   : > { %v1284_v4 = vpop.f32.mrb[26].mxu1 }
 0x36f   : > { %v1289_v5 = vpack.c.bf16 %v1288_v1, %v1288_v1  ;;  %v1978_v28 = vpop.f32.mrb[27].mxu1 }
 0x371   : > { %1291 = vst [vmem:[#allocation5 + $0xc] sm:$0xf] %v1289_v5 }
 0x378   : > { %v1293_v6 = vld [vmem:[#allocation5 + $0x8] sm:$0xff] }
 0x379   : > { %v1827_v7 = vcombine.low %v1293_v6, %v1293_v6  ;;  %v1828_v8 = vcombine.high %v1293_v6, %v1293_v6 }
 0x37b   : > { %1636 = vmatprep.mubr.bf16.mxu1 %v1828_v8 }
 0x37c   : > { %1637 = vmatmul.mubr.bf16.vlgmr.msra.gmra.mrb[28].mxu1 %v1827_v7 }
 0x43f   : > { %v1903_v10 = vpop.f32.mrb[28].mxu0 }
 0x440   : > { %v1904_v11 = vpop.f32.mrb[29].mxu0 }
 0x441   : > { %v1905_v12 = vadd.f32 %v1904_v11, %v1903_v10  ;;  %v1906_v13 = vpop.f32.mrb[30].mxu0 }
 0x442   : > { %v1907_v14 = vpop.f32.mrb[31].mxu0 }
 0x44f   : > { %v1925_v15 = vpop.f32.mrb[28].mxu1 }
 0x450   : > { %v1926_v17 = vpop.f32.mrb[29].mxu1 }
 0x451   : > { %v1927_v18 = vadd.f32 %v1926_v17, %v1925_v15  ;;  %v1928_v19 = vpop.f32.mrb[30].mxu1 }
 0x452   : > { %v1929_v2 = vpop.f32.mrb[31].mxu1 }
 0x453   : > { %v1639_v20 = vadd.f32 %v1927_v18, %v1905_v12 }
 0x455   : > { %v1646_v21 = vsel %vm866_vm6, %v1639_v20, 0.0 }
 0x456   : > { %1647 = vst.msk [vmem:[%s365_s26] sm:$0xff] %vm444_vm0, %v1646_v21 }
 0x457   : > { %2138 = shalt.err (!%p2135_p5)
}
 0x458   : > { %s2139_s22 = scalar_lea.hbm %s2564_s20, 128  ;;  %s2143_s24 = scalar_lea.hbm %s2620_s8, 256 }
 0x459   : > { %p2140_p6 = scmp.ne.s32.totalorder %s2564_s20, %s2139_s22  ;;  %p2144_p10 = scmp.lt.u32.totalorder %s2564_s20, %s2620_s8 }
 0x45a   : > { %p2145_p11 = scmp.lt.u32.totalorder %s2143_s24, %s2139_s22  ;;  %p2147_p13 = scmp.lt.u32.totalorder %s2139_s22, %s2564_s20 }
 0x45b   : > { %p2141_p7 = pnand %p2140_p6, %p2294_p4 }
 0x45c   : > { %p2146_p12 = por %p2145_p11, %p2144_p10 }
 0x45d   : > { %p2142_p9 = pneg %p2141_p7 }
 0x45e   : > { %p2148_p0 = por %p2147_p13, %p2146_p12 }
 0x460   : > { %p2149_p1 = pnand %p2148_p0, %p2142_p9 }
 0x462   : > { %2152 = shalt.err (!%p2149_p1)
}
 0x463   : > { %1979 = dma.vmem_to_hbm [thread:$0]  (%p2294_p4), %s2566_s14, 128, %s2564_s20, %s1649_s11  }
 0x464 PF: > { %p1985_p2 = scmp.ge.s32.totalorder %s2203_s10, 2  ;;  %s1675_s19 = sand.u32 1, %s2183_s27  }
 0x465   : > { %s1676_s30 = scalar_lea.sflag [#allocation7], %s1675_s19 }
 0x466   : > { %p1982_p3 = pnand %p1985_p2, %p2301_p8 }
 0x468   : > { %2178 = dma.done.wait (!%p1982_p3), %s1676_s30, 128  }
 0x469   : > { %2180 = vsyncadd (!%p1982_p3), %s1676_s30, 4294967168  ;;  %s21_s10 = sadd.s32 1, %s2203_s10   ;;  %s2625_s15 = sld [smem:[#allocation9_spill]] }
 0x46a   : > { %p18_p5 = scmp.ge.s32.totalorder %s21_s10, 4   ;;  %s2626_s27 = smov %s2187_s28 }
 0x46b   : > { %s2627_s28 = smov %s2191_s29  ;;  %s2628_s29 = smov %s2307_s18 }
 0x46c   : > { %s2629_s30 = smov %s2199_s9  ;;  %20 = sbr.rel (!%p18_p5) target bundleno = 4 (0x4), region = 112 }
 0x46f   : > { %s2630_s9 = smov %s2625_s15 }
 0x473   :  { %1681 = vsyncpa [#allocation7], 1 }
 0x474   :  { %1683 = vsyncpa [#allocation7 + $0x1], 1 }

</bundles_post_ra>
